<compile_context>
chip_gen: v6e
topology: v6e:2x2x1
jax: 0.10.0
libtpu: 0.0.40
codegen_flags: <defaults>
</compile_context>

<pallas_src>
import jax
import jax.numpy as jnp
from jax.experimental import pallas as pl
from jax.experimental.pallas import tpu as pltpu


def _fused_kernel(x_ref, wmean_ref, c_ref, o_ref):
    # x_ref:     (TB, K)  input tile (also the residual)
    # wmean_ref: (1, K)   column-mean of the Linear weight, f32
    # c_ref:     (1, 1)   mean(bias - subtract), f32
    # o_ref:     (TB, K)  output tile
    x = x_ref[...].astype(jnp.float32)

    # per-row weighted sum: VPU multiply + XLU lane-reduce  ->  (TB, 1)
    m = jnp.sum(x * wmean_ref[...], axis=-1, keepdims=True) + c_ref[...]

    # tanh-approx GELU (matches the CUDA gelu_cuda exactly), scalar per row
    g = 0.5 * m * (1.0 + jnp.tanh(0.7978845608 * (m + 0.044715 * m * m * m)))

    # broadcast-add back onto the original input
    o_ref[...] = (g + x).astype(o_ref.dtype)


def _round_up(v, m):
    return ((v + m - 1) // m) * m


def fused_forward(x, weight, bias, subtract, *, tb=256):
    """x: (B, K) f32, weight: (N, K) f32 (PyTorch Linear layout), bias/subtract: (N,)."""
    B, K = x.shape

    # Algebraic collapse of the GEMM (see header comment).
    w_mean = jnp.mean(weight.astype(jnp.float32), axis=0).reshape(1, K)
    c = jnp.mean(bias.astype(jnp.float32) - subtract.astype(jnp.float32)).reshape(1, 1)

    # Batch tiling: multiple of 8 sublanes, pad ragged batches, slice after.
    tb_eff = min(tb, _round_up(B, 8))
    padded_B = _round_up(B, tb_eff)
    x_in = jnp.pad(x, ((0, padded_B - B), (0, 0))) if padded_B != B else x

    out = pl.pallas_call(
        _fused_kernel,
        out_shape=jax.ShapeDtypeStruct((padded_B, K), x.dtype),
        grid_spec=pltpu.PrefetchScalarGridSpec(
            num_scalar_prefetch=0,
            grid=(padded_B // tb_eff,),
            in_specs=[
                pl.BlockSpec((tb_eff, K), lambda i: (i, 0)),  # x tile (streamed)
                pl.BlockSpec((1, K), lambda i: (0, 0)),        # w_mean (tiny, resident)
                pl.BlockSpec((1, 1), lambda i: (0, 0)),        # scalar constant
            ],
            out_specs=pl.BlockSpec((tb_eff, K), lambda i: (i, 0)),
        ),
        compiler_params=pltpu.CompilerParams(
            dimension_semantics=("parallel",)),
    )(x_in, w_mean, c)

    return out[:B]


def _reference(x, weight, bias, subtract):
    x1 = x @ weight.T + bias
    val = x1 - subtract
    mean = jnp.mean(val, axis=-1, keepdims=True)
    g = 0.5 * mean * (1.0 + jnp.tanh(0.7978845608 * (mean + 0.044715 * mean ** 3)))
    return g + x


if __name__ == "__main__":
    B = 64
    in_features = 1024
    out_features = 512

    key = jax.random.PRNGKey(0)
    kx, kw, kb, ks = jax.random.split(key, 4)

    x = jax.random.normal(kx, (B, in_features), dtype=jnp.float32)
    # deterministic synthetic parameters (nn.Linear-like shapes)
    weight = jax.random.normal(kw, (out_features, in_features), dtype=jnp.float32) * 0.05
    bias = jax.random.normal(kb, (out_features,), dtype=jnp.float32) * 0.05
    subtract = jax.random.normal(ks, (out_features,), dtype=jnp.float32)

    out = fused_forward(x, weight, bias, subtract)
    out = jax.block_until_ready(out)

    ref = _reference(x, weight, bias, subtract)
    assert out.shape == (B, in_features)
    assert jnp.allclose(out, ref, atol=1e-4, rtol=1e-4)

    print("KERNEL_OK")
</pallas_src>

<mosaic_0001>
module attributes {stable_mosaic.version = 11 : i64} {
  func.func @_fused_kernel(%arg0: i32, %arg1: memref<64x1024xf32, #tpu.memory_space<vmem>>, %arg2: memref<1x1024xf32, #tpu.memory_space<vmem>>, %arg3: memref<1x1xf32, #tpu.memory_space<vmem>>, %arg4: memref<64x1024xf32, #tpu.memory_space<vmem>>) attributes {dimension_semantics = [#tpu.dimension_semantics<parallel>], iteration_bounds = array<i64: 1>, scalar_prefetch = 0 : i64, scratch_operands = 0 : i64, tpu.core_type = #tpu.core_type<tc>, window_params = [{transform_indices = @transform_0, window_bounds = array<i64: 64, 1024>}, {pipeline_mode = #tpu.pipeline_mode<synchronous>, transform_indices = @transform_1, window_bounds = array<i64: 1, 1024>}, {pipeline_mode = #tpu.pipeline_mode<synchronous>, transform_indices = @transform_2, window_bounds = array<i64: 1, 1>}, {transform_indices = @transform_3, window_bounds = array<i64: 64, 1024>}]} {
    %c0 = arith.constant 0 : index
    %c0_0 = arith.constant 0 : index
    %0 = vector.load %arg1[%c0, %c0_0] : memref<64x1024xf32, #tpu.memory_space<vmem>>, vector<64x1024xf32>
    %c0_1 = arith.constant 0 : index
    %c0_2 = arith.constant 0 : index
    %1 = vector.load %arg2[%c0_1, %c0_2] : memref<1x1024xf32, #tpu.memory_space<vmem>>, vector<1x1024xf32>
    %2 = vector.broadcast %1 : vector<1x1024xf32> to vector<64x1024xf32>
    %3 = arith.mulf %0, %2 : vector<64x1024xf32>
    %cst = arith.constant dense<0.000000e+00> : vector<64xf32>
    %4 = vector.multi_reduction <add>, %3, %cst [1] : vector<64x1024xf32> to vector<64xf32>
    %5 = vector.shape_cast %4 : vector<64xf32> to vector<64x1xf32>
    %c0_3 = arith.constant 0 : index
    %c0_4 = arith.constant 0 : index
    %6 = vector.load %arg3[%c0_3, %c0_4] : memref<1x1xf32, #tpu.memory_space<vmem>>, vector<1x1xf32>
    %7 = vector.broadcast %6 : vector<1x1xf32> to vector<64x1xf32>
    %8 = arith.addf %5, %7 : vector<64x1xf32>
    %cst_5 = arith.constant 5.000000e-01 : f32
    %9 = vector.broadcast %cst_5 : f32 to vector<64x1xf32>
    %10 = arith.mulf %9, %8 : vector<64x1xf32>
    %cst_6 = arith.constant 4.471500e-02 : f32
    %11 = vector.broadcast %cst_6 : f32 to vector<64x1xf32>
    %12 = arith.mulf %11, %8 : vector<64x1xf32>
    %13 = arith.mulf %12, %8 : vector<64x1xf32>
    %14 = arith.mulf %13, %8 : vector<64x1xf32>
    %15 = arith.addf %8, %14 : vector<64x1xf32>
    %cst_7 = arith.constant 0.797884583 : f32
    %16 = vector.broadcast %cst_7 : f32 to vector<64x1xf32>
    %17 = arith.mulf %16, %15 : vector<64x1xf32>
    %18 = math.tanh %17 : vector<64x1xf32>
    %cst_8 = arith.constant 1.000000e+00 : f32
    %19 = vector.broadcast %cst_8 : f32 to vector<64x1xf32>
    %20 = arith.addf %19, %18 : vector<64x1xf32>
    %21 = arith.mulf %10, %20 : vector<64x1xf32>
    %22 = vector.broadcast %21 : vector<64x1xf32> to vector<64x1024xf32>
    %23 = arith.addf %22, %0 : vector<64x1024xf32>
    %c0_9 = arith.constant 0 : index
    %c0_10 = arith.constant 0 : index
    %24 = vector.load %arg4[%c0_9, %c0_10] : memref<64x1024xf32, #tpu.memory_space<vmem>>, vector<64x1024xf32>
    tpu.vector_store %arg4[%c0_9, %c0_10], %23 {strides = array<i32>} : memref<64x1024xf32, #tpu.memory_space<vmem>>, vector<64x1024xf32>,
    return
  }
  func.func @transform_0(%arg0: i32) -> (i32, i32) {
    %c0_i32 = arith.constant 0 : i32
    %c0_i32_0 = arith.constant 0 : i32
    return %arg0, %c0_i32 : i32, i32
  }
  func.func @transform_1(%arg0: i32) -> (i32, i32) {
    %c0_i32 = arith.constant 0 : i32
    %c0_i32_0 = arith.constant 0 : i32
    %c0_i32_1 = arith.constant 0 : i32
    return %c0_i32, %c0_i32_0 : i32, i32
  }
  func.func @transform_2(%arg0: i32) -> (i32, i32) {
    %c0_i32 = arith.constant 0 : i32
    %c0_i32_0 = arith.constant 0 : i32
    %c0_i32_1 = arith.constant 0 : i32
    return %c0_i32, %c0_i32_0 : i32, i32
  }
  func.func @transform_3(%arg0: i32) -> (i32, i32) {
    %c0_i32 = arith.constant 0 : i32
    %c0_i32_0 = arith.constant 0 : i32
    return %arg0, %c0_i32 : i32, i32
  }
}

</mosaic_0001>

<bundles_post_ra>
// kernel: tpu_custom_call.1
= control target key start
LH: loop header
LB: loop body
LE: loop exit
PB: predicated region body
PF: predicated region fallthrough
CT: control target
= control target key end

     0   :  { %s1050_s0 = inlined_call_operand.hbm [shape: f32[64,1024], index: 0, kind: input, shape index: {}]   ;;  %s1051_s1 = inlined_call_operand.hbm [shape: f32[1,1024], index: 1, kind: input, shape index: {}]   ;;  %s1052_s2 = inlined_call_operand.<no memory space> [shape: f32[1,1], index: 2, kind: input, shape index: {}]   ;;  %s1053_s3 = inlined_call_operand.hbm [shape: f32[64,1024], index: 3, kind: output, shape index: {}]  }
   0x1   :  { %v8_v0 = vstv %s1052_s2 }
   0x2   :  { %9 = vst [vmem:[#allocation2] sm:$0x1] %v8_v0 }
   0x3   :  { %10 = vsyncpa [#allocation4], 0 }
   0x4   :  { %11 = vsyncpa [#allocation7], 0 }
   0x5   :  { %12 = vsyncpa [#allocation5], 0  ;;  %s649_s14 = smov [#allocation3]  }
   0x6   :  { %s18_s15 = sshll.u32 %s649_s14, 4  ;;  %s19_s15 = int_to_ptr.vmem [resolvable:$true] %s18_s15 }
   0x7   :  { %s591_s16 = scalar_lea.vmem %s19_s15, 8192  ;;  %p596_p1 = scmp.lt.s32.totalorder %s19_s15, %s19_s15 }
   0x8   :  { %p592_p0 = scmp.ne.s32.totalorder %s19_s15, %s591_s16  ;;  %p597_p2 = scmp.lt.s32.totalorder %s591_s16, %s591_s16 }
   0xa   :  { %p598_p3 = por %p597_p2, %p596_p1 }
   0xc   :  { %p599_p4 = pnand %p598_p3, %p592_p0 }
   0xe   :  { %602 = shalt.err (!%p599_p4)
}
   0xf   :  { %s650_s17 = smov 1024   ;;  %s651_s18 = smov 64  }
  0x10   :  { %24 = dma.hbm_to_vmem [thread:$0]  %s1050_s0, 8192, %s19_s15, [#allocation4], %s650_s17, %s650_s17, %s651_s18  }
  0x11   :  { %s652_s20 = smov [#allocation6]  }
  0x12   :  { %s31_s21 = sshll.u32 %s652_s20, 4  ;;  %s32_s21 = int_to_ptr.vmem [resolvable:$true] %s31_s21 }
  0x13   :  { %s611_s22 = scalar_lea.vmem %s32_s21, 128  ;;  %p616_p6 = scmp.lt.s32.totalorder %s32_s21, %s32_s21 }
  0x14   :  { %p612_p5 = scmp.ne.s32.totalorder %s32_s21, %s611_s22  ;;  %p617_p7 = scmp.lt.s32.totalorder %s611_s22, %s611_s22 }
  0x16   :  { %p618_p8 = por %p617_p7, %p616_p6 }
  0x18   :  { %p619_p9 = pnand %p618_p8, %p612_p5 }
  0x1a   :  { %622 = shalt.err (!%p619_p9)
}
  0x1b   :  { %34 = dma.hbm_to_vmem [thread:$0]  %s1051_s1, 128, %s32_s21, [#allocation7]  }
  0x1c   :  { %643 = dma.done.wait [#allocation4], 8192  }
  0x1d   :  { %644 = vsyncadd [#allocation4], 4294959104 }
  0x1e   :  { %645 = dma.done.wait [#allocation7], 128  }
  0x1f   :  { %646 = vsyncadd [#allocation7], 4294967168  ;;  %v109_v1 = vlaneseq  ;;  %v687_v9 = vld [vmem:[#allocation3 + $0x80] sm:$0xff]  ;;  %v689_v10 = vld [vmem:[#allocation3 + $0x88] sm:$0xff]  ;;  %s654_s0 = smov [#allocation8]  }
  0x20   :  { %v691_v11 = vld [vmem:[#allocation3 + $0x90] sm:$0xff]  ;;  %v107_v12 = vld [vmem:[#allocation6] sm:$0xff]  ;;  %v693_v15 = vld [vmem:[#allocation3 + $0x98] sm:$0xff]  ;;  %s545_s1 = sshll.u32 %s654_s0, 4  ;;  %s546_s1 = int_to_ptr.vmem [resolvable:$true] %s545_s1 }
  0x21   :  { %v110_v2 = vshrl.u32 %v109_v1, 7  ;;  %v707_v22 = vld [vmem:[#allocation3] sm:$0xff]  ;;  %v709_v23 = vld [vmem:[#allocation3 + $0x8] sm:$0xff]  ;;  %v711_v24 = vld [vmem:[#allocation3 + $0x10] sm:$0xff]  ;;  %s623_s25 = scalar_lea.vmem %s546_s1, 8192  ;;  %p628_p11 = scmp.lt.s32.totalorder %s546_s1, %s546_s1 }
  0x22   :  { %v713_v25 = vld [vmem:[#allocation3 + $0xa0] sm:$0xff]  ;;  %v715_v26 = vld [vmem:[#allocation3 + $0xa8] sm:$0xff]  ;;  %v723_v30 = vld [vmem:[#allocation3 + $0xb0] sm:$0xff]  ;;  %p624_p10 = scmp.ne.s32.totalorder %s546_s1, %s623_s25  ;;  %p629_p12 = scmp.lt.s32.totalorder %s623_s25, %s623_s25 }
  0x23   :  { %v111_v3 = vsub.s32 0, %v110_v2  ;;  %v115_v4 = vsub.s32 1, %v110_v2  ;;  %v119_v5 = vsub.s32 2, %v110_v2  ;;  %v123_v6 = vsub.s32 3, %v110_v2  ;;  %v731_v34 = vld [vmem:[#allocation3 + $0x18] sm:$0xff]  ;;  %v733_v35 = vld [vmem:[#allocation3 + $0xc0] sm:$0xff] }
  0x24   :  { %v127_v7 = vsub.s32 4, %v110_v2  ;;  %v131_v8 = vsub.s32 5, %v110_v2  ;;  %v135_v13 = vsub.s32 6, %v110_v2  ;;  %v139_v14 = vsub.s32 7, %v110_v2  ;;  %v735_v36 = vld [vmem:[#allocation3 + $0xb8] sm:$0xff]  ;;  %v743_v41 = vld [vmem:[#allocation3 + $0xc8] sm:$0xff]  ;;  %p630_p13 = por %p629_p12, %p628_p11 }
  0x25   :  { %v695_v16 = vrot.slane %v107_v12, %v111_v3  ;;  %v697_v17 = vrot.slane %v107_v12, %v115_v4  ;;  %v699_v18 = vrot.slane %v107_v12, %v119_v5  ;;  %v701_v19 = vrot.slane %v107_v12, %v123_v6  ;;  %1083 = vst [vmem:[#allocation12_spill] sm:$0xff] %v743_v41  ;;  %v745_v42 = vld [vmem:[#allocation3 + $0xd0] sm:$0xff]  ;;  %v751_v45 = vld [vmem:[#allocation3 + $0x20] sm:$0xff]  ;;  %v753_v46 = vld [vmem:[#allocation3 + $0x28] sm:$0xff] }
  0x26   :  { %v703_v20 = vrot.slane %v107_v12, %v127_v7  ;;  %v705_v21 = vrot.slane %v107_v12, %v131_v8  ;;  %v725_v31 = vrot.slane %v107_v12, %v135_v13  ;;  %v727_v32 = vrot.slane %v107_v12, %v139_v14  ;;  %1084 = vst [vmem:[#allocation13_spill] sm:$0xff] %v745_v42  ;;  %v757_v50 = vld [vmem:[#allocation3 + $0xd8] sm:$0xff]  ;;  %v761_v52 = vld [vmem:[#allocation3 + $0x40] sm:$0xff]  ;;  %v763_v53 = vld [vmem:[#allocation3 + $0x48] sm:$0xff]  ;;  %p631_p0 = pnand %p630_p13, %p624_p10 }
  0x27   :  { %v165_v27 = vmul.f32 %v695_v16, %v687_v9  ;;  %v166_v28 = vmul.f32 %v697_v17, %v689_v10  ;;  %v167_v29 = vmul.f32 %v699_v18, %v691_v11  ;;  %v168_v33 = vmul.f32 %v701_v19, %v693_v15  ;;  %1085 = vst [vmem:[#allocation14_spill] sm:$0xff] %v757_v50  ;;  %v769_v56 = vld [vmem:[#allocation3 + $0x30] sm:$0xff]  ;;  %v777_v61 = vld [vmem:[#allocation3 + $0x38] sm:$0xff]  ;;  %v783_v1 = vld [vmem:[#allocation3 + $0xe0] sm:$0xff] }
  0x28   :  { %v149_v38 = vmul.f32 %v695_v16, %v707_v22  ;;  %v150_v39 = vmul.f32 %v697_v17, %v709_v23  ;;  %v151_v40 = vmul.f32 %v699_v18, %v711_v24  ;;  %v169_v43 = vmul.f32 %v703_v20, %v713_v25  ;;  %v775_v59 = vld [vmem:[#allocation3 + $0x50] sm:$0xff]  ;;  %1086 = vst [vmem:[#allocation15_spill] sm:$0xff] %v783_v1  ;;  %v785_v2 = vld [vmem:[#allocation3 + $0xe8] sm:$0xff]  ;;  %v789_v5 = vld [vmem:[#allocation3 + $0x58] sm:$0xff] }
  0x29   :  { %v231_v37 = vadd.f32 %v166_v28, %v165_v27  ;;  %v170_v44 = vmul.f32 %v705_v21, %v715_v26  ;;  %v152_v48 = vmul.f32 %v701_v19, %v731_v34  ;;  %v173_v51 = vmul.f32 %v695_v16, %v733_v35  ;;  %1087 = vst [vmem:[#allocation16_spill] sm:$0xff] %v785_v2  ;;  %v797_v14 = vld [vmem:[#allocation3 + $0xf0] sm:$0xff]  ;;  %v801_v28 = vld [vmem:[#allocation3 + $0x140] sm:$0xff] }
  0x2a   :  { %v213_v49 = vadd.f32 %v150_v39, %v149_v38  ;;  %v171_v54 = vmul.f32 %v725_v31, %v723_v30  ;;  %v172_v55 = vmul.f32 %v727_v32, %v735_v36  ;;  %v174_v57 = vmul.f32 %v697_v17, %v743_v41  ;;  %1088 = vst [vmem:[#allocation17_spill] sm:$0xff] %v797_v14 }
  0x2b   :  { %v232_v47 = vadd.f32 %v231_v37, %v167_v29  ;;  %v175_v58 = vmul.f32 %v699_v18, %v745_v42  ;;  %v153_v62 = vmul.f32 %v703_v20, %v751_v45  ;;  %v154_v63 = vmul.f32 %v705_v21, %v753_v46  ;;  %1089 = vst [vmem:[#allocation18_spill] sm:$0xff] %v801_v28  ;;  %v803_v29 = vld [vmem:[#allocation3 + $0x148] sm:$0xff]  ;;  %v853_v42 = vld [vmem:[#allocation3 + $0x118] sm:$0xff] }
  0x2c   :  { %v214_v0 = vadd.f32 %v213_v49, %v151_v40  ;;  %v176_v3 = vmul.f32 %v701_v19, %v757_v50  ;;  %v240_v4 = vadd.f32 %v174_v57, %v173_v51  ;;  %v157_v6 = vmul.f32 %v695_v16, %v761_v52  ;;  %1090 = vst [vmem:[#allocation19_spill] sm:$0xff] %v803_v29  ;;  %v811_v40 = vld [vmem:[#allocation3 + $0x60] sm:$0xff]  ;;  %v815_v49 = vld [vmem:[#allocation3 + $0x68] sm:$0xff] }
  0x2d   :  { %v233_v60 = vadd.f32 %v232_v47, %v168_v33  ;;  %v158_v7 = vmul.f32 %v697_v17, %v763_v53  ;;  %v155_v12 = vmul.f32 %v725_v31, %v769_v56  ;;  %v159_v27 = vmul.f32 %v699_v18, %v775_v59 }
  0x2e   :  { %v215_v13 = vadd.f32 %v214_v0, %v152_v48  ;;  %v156_v33 = vmul.f32 %v727_v32, %v777_v61  ;;  %v177_v37 = vmul.f32 %v703_v20, %v783_v1  ;;  %v178_v38 = vmul.f32 %v705_v21, %v785_v2  ;;  %v813_v48 = vld [vmem:[#allocation3 + $0xf8] sm:$0xff] }
  0x2f   :  { %v234_v8 = vadd.f32 %v233_v60, %v169_v43  ;;  %v241_v39 = vadd.f32 %v240_v4, %v175_v58  ;;  %1091 = vst [vmem:[#allocation20_spill] sm:$0xff] %v813_v48  ;;  %v160_v51 = vmul.f32 %v701_v19, %v789_v5  ;;  %v222_v57 = vadd.f32 %v158_v7, %v157_v6  ;;  %v819_v60 = vld [vmem:[#allocation3 + $0x150] sm:$0xff]  ;;  %v823_v2 = vld [vmem:[#allocation3 + $0x158] sm:$0xff]  ;;  %v831_v7 = vld [vmem:[#allocation3 + $0x100] sm:$0xff] }
  0x30   :  { %v216_v47 = vadd.f32 %v215_v13, %v153_v62  ;;  %1092 = vst [vmem:[#allocation21_spill] sm:$0xff] %v819_v60  ;;  %v179_v0 = vmul.f32 %v725_v31, %v797_v14  ;;  %1093 = vst [vmem:[#allocation22_spill] sm:$0xff] %v823_v2  ;;  %v190_v58 = vmul.f32 %v697_v17, %v803_v29  ;;  %v833_v13 = vld [vmem:[#allocation3 + $0x108] sm:$0xff]  ;;  %v837_v14 = vld [vmem:[#allocation3 + $0x70] sm:$0xff] }
  0x31   :  { %v235_v43 = vadd.f32 %v234_v8, %v170_v44  ;;  %v242_v1 = vadd.f32 %v241_v39, %v176_v3  ;;  %v189_v44 = vmul.f32 %v695_v16, %v801_v28  ;;  %v161_v8 = vmul.f32 %v703_v20, %v811_v40  ;;  %1094 = vst [vmem:[#allocation23_spill] sm:$0xff] %v831_v7  ;;  %v847_v29 = vld [vmem:[#allocation3 + $0x160] sm:$0xff] }
  0x32   :  { %v217_v4 = vadd.f32 %v216_v47, %v154_v63  ;;  %v223_v6 = vadd.f32 %v222_v57, %v159_v27  ;;  %1095 = vst [vmem:[#allocation24_spill] sm:$0xff] %v833_v13  ;;  %v180_v3 = vmul.f32 %v727_v32, %v813_v48  ;;  %v162_v28 = vmul.f32 %v705_v21, %v815_v49  ;;  %v843_v63 = vld [vmem:[#allocation3 + $0x110] sm:$0xff]  ;;  %v845_v47 = vld [vmem:[#allocation3 + $0x78] sm:$0xff]  ;;  %v851_v48 = vld [vmem:[#allocation3 + $0x168] sm:$0xff] }
  0x33   :  { %v236_v62 = vadd.f32 %v235_v43, %v171_v54  ;;  %v243_v39 = vadd.f32 %v242_v1, %v177_v37  ;;  %v191_v54 = vmul.f32 %v699_v18, %v819_v60  ;;  %1096 = vst [vmem:[#allocation25_spill] sm:$0xff] %v843_v63  ;;  %1097 = vst [vmem:[#allocation26_spill] sm:$0xff] %v847_v29 }
  0x34   :  { %v218_v27 = vadd.f32 %v217_v4, %v155_v12  ;;  %v224_v57 = vadd.f32 %v223_v6, %v160_v51  ;;  %v192_v1 = vmul.f32 %v701_v19, %v823_v2  ;;  %1098 = vst [vmem:[#allocation27_spill] sm:$0xff] %v851_v48  ;;  %v258_v50 = vadd.f32 %v190_v58, %v189_v44  ;;  %v863_v4 = vld [vmem:[#allocation3 + $0x1c0] sm:$0xff]  ;;  %v865_v44 = vld [vmem:[#allocation3 + $0x1c8] sm:$0xff]  ;;  %v877_v2 = vld [vmem:[#allocation3 + $0x178] sm:$0xff] }
  0x35   :  { %v237_v43 = vadd.f32 %v236_v62, %v172_v55  ;;  %v244_v37 = vadd.f32 %v243_v39, %v178_v38  ;;  %v181_v60 = vmul.f32 %v695_v16, %v831_v7  ;;  %v182_v55 = vmul.f32 %v697_v17, %v833_v13  ;;  %1099 = vst [vmem:[#allocation28_spill] sm:$0xff] %v863_v4  ;;  %v885_v13 = vld [vmem:[#allocation3 + $0x1d8] sm:$0xff]  ;;  %v891_v7 = vld [vmem:[#allocation3 + $0x130] sm:$0xff] }
  0x36   :  { %v219_v12 = vadd.f32 %v218_v27, %v156_v33  ;;  %v163_v51 = vmul.f32 %v725_v31, %v837_v14  ;;  %v225_v62 = vadd.f32 %v224_v57, %v161_v8  ;;  %v183_v38 = vmul.f32 %v699_v18, %v843_v63  ;;  %1100 = vst [vmem:[#allocation29_spill] sm:$0xff] %v865_v44  ;;  %v871_v33 = vld [vmem:[#allocation3 + $0x120] sm:$0xff]  ;;  %v873_v27 = vld [vmem:[#allocation3 + $0x1d0] sm:$0xff] }
  0x37   :  { %238 = vadd.xlane.f32.xlu1 %v237_v43  ;;  %v245_v58 = vadd.f32 %v244_v37, %v179_v0  ;;  %v164_v6 = vmul.f32 %v727_v32, %v845_v47  ;;  %v193_v39 = vmul.f32 %v703_v20, %v847_v29  ;;  %v259_v43 = vadd.f32 %v258_v50, %v191_v54  ;;  %v875_v57 = vld [vmem:[#allocation3 + $0x170] sm:$0xff]  ;;  %v881_v37 = vld [vmem:[#allocation3 + $0x128] sm:$0xff] }
  0x38   :  { %1101 = vst [vmem:[#allocation30_spill] sm:$0xff] %v871_v33  ;;  %1102 = vst [vmem:[#allocation31_spill] sm:$0xff] %v873_v27  ;;  %220 = vadd.xlane.f32.xlu0 %v219_v12  ;;  %v226_v8 = vadd.f32 %v225_v62, %v162_v28  ;;  %v194_v0 = vmul.f32 %v705_v21, %v851_v48  ;;  %v184_v63 = vmul.f32 %v701_v19, %v853_v42 }
  0x39   :  { %1103 = vst [vmem:[#allocation32_spill] sm:$0xff] %v875_v57  ;;  %1104 = vst [vmem:[#allocation33_spill] sm:$0xff] %v877_v2  ;;  %v249_v29 = vadd.f32 %v182_v55, %v181_v60  ;;  %v246_v50 = vadd.f32 %v245_v58, %v180_v3  ;;  %v260_v54 = vadd.f32 %v259_v43, %v192_v1  ;;  %v897_v3 = vld [vmem:[#allocation3 + $0x180] sm:$0xff]  ;;  %v899_v1 = vld [vmem:[#allocation3 + $0x188] sm:$0xff] }
  0x3a   :  { %1105 = vst [vmem:[#allocation34_spill] sm:$0xff] %v885_v13  ;;  %v205_v28 = vmul.f32 %v695_v16, %v863_v4  ;;  %v206_v12 = vmul.f32 %v697_v17, %v865_v44  ;;  %v227_v62 = vadd.f32 %v226_v8, %v163_v51  ;;  %v185_v48 = vmul.f32 %v703_v20, %v871_v33  ;;  %v907_v8 = vld [vmem:[#allocation3 + $0x1e0] sm:$0xff]  ;;  %v913_v4 = vld [vmem:[#allocation3 + $0x1e8] sm:$0xff] }
  0x3b   :  { %v250_v41 = vadd.f32 %v249_v29, %v183_v38  ;;  %v207_v60 = vmul.f32 %v699_v18, %v873_v27  ;;  %247 = vadd.xlane.f32.xlu1 %v246_v50  ;;  %v195_v55 = vmul.f32 %v725_v31, %v875_v57  ;;  %v196_v51 = vmul.f32 %v727_v32, %v877_v2  ;;  %v909_v29 = vld [vmem:[#allocation3 + $0x190] sm:$0xff]  ;;  %v911_v27 = vld [vmem:[#allocation3 + $0x138] sm:$0xff] }
  0x3c   :  { %v261_v58 = vadd.f32 %v260_v54, %v193_v39  ;;  %v186_v43 = vmul.f32 %v705_v21, %v881_v37  ;;  %1106 = vst [vmem:[#allocation35_spill] sm:$0xff] %v907_v8  ;;  %1107 = vst [vmem:[#allocation36_spill] sm:$0xff] %v909_v29  ;;  %v228_v38 = vadd.f32 %v227_v62, %v164_v6  ;;  %v919_v54 = vld [vmem:[#allocation3 + $0x198] sm:$0xff] }
  0x3d   :  { %v251_v44 = vadd.f32 %v250_v41, %v184_v63  ;;  %1108 = vst [vmem:[#allocation37_spill] sm:$0xff] %v913_v4  ;;  %v208_v50 = vmul.f32 %v701_v19, %v885_v13  ;;  %v276_v57 = vadd.f32 %v206_v12, %v205_v28  ;;  %v187_v39 = vmul.f32 %v725_v31, %v891_v7  ;;  %v925_v63 = vld [vmem:[#allocation3 + $0x1f0] sm:$0xff]  ;;  %v935_v13 = vld [vmem:[#allocation3 + $0x1a0] sm:$0xff] }
  0x3e   :  { %v262_v33 = vadd.f32 %v261_v58, %v194_v0  ;;  %v197_v2 = vmul.f32 %v695_v16, %v897_v3  ;;  %v198_v6 = vmul.f32 %v697_v17, %v899_v1  ;;  %229 = vadd.xlane.f32.xlu0 %v228_v38  ;;  %1109 = vst [vmem:[#allocation38_spill] sm:$0xff] %v925_v63 }
  0x3f   :  { %v252_v41 = vadd.f32 %v251_v44, %v185_v48  ;;  %v209_v62 = vmul.f32 %v703_v20, %v907_v8  ;;  %v277_v28 = vadd.f32 %v276_v57, %v207_v60  ;;  %v199_v0 = vmul.f32 %v699_v18, %v909_v29  ;;  %v937_v48 = vld [vmem:[#allocation3 + $0x1f8] sm:$0xff] }
  0x40   :  { %v263_v12 = vadd.f32 %v262_v33, %v195_v55  ;;  %v188_v58 = vmul.f32 %v727_v32, %v911_v27  ;;  %v210_v16 = vmul.f32 %v705_v21, %v913_v4  ;;  %1110 = vst [vmem:[#allocation39_spill] sm:$0xff] %v937_v48  ;;  %v200_v38 = vmul.f32 %v701_v19, %v919_v54  ;;  %v943_v33 = vld [vmem:[#allocation3 + $0x1a8] sm:$0xff] }
  0x41   :  { %v253_v17 = vadd.f32 %v252_v41, %v186_v43  ;;  %v278_v44 = vadd.f32 %v277_v28, %v208_v50  ;;  %v267_v57 = vadd.f32 %v198_v6, %v197_v2  ;;  %v211_v18 = vmul.f32 %v725_v31, %v925_v63  ;;  %v949_v50 = vld [vmem:[#allocation3 + $0x1b0] sm:$0xff]  ;;  %v953_v41 = vld [vmem:[#allocation3 + $0x1b8] sm:$0xff] }
  0x42   :  { %v264_v60 = vadd.f32 %v263_v12, %v196_v51  ;;  %v201_v4 = vmul.f32 %v703_v20, %v935_v13  ;;  %v212_v43 = vmul.f32 %v727_v32, %v937_v48  ;;  %v202_v51 = vmul.f32 %v705_v21, %v943_v33  ;;  %1111 = vst [vmem:[#allocation40_spill] sm:$0xff] %v953_v41  ;;  %v558_v21 = vld [vmem:[#allocation2] ss:$0 sm:$0xff] }
  0x43   :  { %v254_v55 = vadd.f32 %v253_v17, %v187_v39  ;;  %v279_v8 = vadd.f32 %v278_v44, %v209_v62  ;;  %v268_v29 = vadd.f32 %v267_v57, %v199_v0  ;;  %v203_v20 = vmul.f32 %v725_v31, %v949_v50 }
  0x44   :  { %265 = vadd.xlane.f32.xlu1 %v264_v60  ;;  %v204_v0 = vmul.f32 %v727_v32, %v953_v41 }
  0x45   :  { %v255_v19 = vadd.f32 %v254_v55, %v188_v58  ;;  %v280_v2 = vadd.f32 %v279_v8, %v210_v16  ;;  %v269_v6 = vadd.f32 %v268_v29, %v200_v38  ;;  %v653_v16 = vmov 0  }
  0x46   :  { %565 = vset.pattern.permute.xlu0 %v653_v16  ;;  %566 = vset.pattern.permute.xlu1 %v653_v16 }
  0x47   :  { %256 = vadd.xlane.f32.xlu0 %v255_v19  ;;  %v281_v39 = vadd.f32 %v280_v2, %v211_v18  ;;  %v270_v62 = vadd.f32 %v269_v6, %v201_v4 }
  0x49   :  { %v282_v28 = vadd.f32 %v281_v39, %v212_v43  ;;  %v271_v12 = vadd.f32 %v270_v62, %v202_v51 }
  0x4b   :  { %283 = vadd.xlane.f32.xlu1 %v282_v28  ;;  %v272_v58 = vadd.f32 %v271_v12, %v203_v20 }
  0x4d   :  { %v273_v8 = vadd.f32 %v272_v58, %v204_v0 }
  0x4f   :  { %274 = vadd.xlane.f32.xlu0 %v273_v8 }
  0xc0   :  { %v239_v29 = vpop.xlane.xlu1 %238 }
  0xc1   :  { %v959_v17 = vadd.f32 %v558_v21, %v239_v29  ;;  %v221_v44 = vpop.xlane.xlu0 %220 }
  0xc2   :  { %v292_v4 = vadd.f32 %v558_v21, %v221_v44 }
  0xc3   :  { %v310_v31 = vmul.f32 0.044715, %v959_v17 }
  0xc4   :  { %v308_v57 = vmul.f32 0.044715, %v292_v4  ;;  %v248_v32 = vpop.xlane.xlu1 %247  ;;  %v300_v63 = vmul.f32 0.5, %v292_v4 }
  0xc5   :  { %v318_v38 = vmul.f32 %v310_v31, %v959_v17  ;;  %v963_v60 = vadd.f32 %v558_v21, %v248_v32 }
  0xc6   :  { %v316_v18 = vmul.f32 %v308_v57, %v292_v4 }
  0xc7   :  { %v311_v55 = vmul.f32 0.044715, %v963_v60  ;;  %v230_v43 = vpop.xlane.xlu0 %229  ;;  %v326_v19 = vmul.f32 %v318_v38, %v959_v17 }
  0xc8   :  { %v293_v2 = vadd.f32 %v558_v21, %v230_v43  ;;  %v324_v51 = vmul.f32 %v316_v18, %v292_v4 }
  0xc9   :  { %v319_v6 = vmul.f32 %v311_v55, %v963_v60  ;;  %v334_v62 = vadd.f32 %v326_v19, %v959_v17 }
  0xca   :  { %v309_v39 = vmul.f32 0.044715, %v293_v2  ;;  %v332_v20 = vadd.f32 %v324_v51, %v292_v4 }
  0xcb   :  { %v327_v58 = vmul.f32 %v319_v6, %v963_v60  ;;  %v342_v31 = vmul.f32 0.7978846, %v334_v62 }
  0xcc   :  { %v317_v28 = vmul.f32 %v309_v39, %v293_v2  ;;  %v340_v12 = vmul.f32 0.7978846, %v332_v20 }
  0xcd   :  { %v266_v0 = vpop.xlane.xlu1 %265  ;;  %v335_v32 = vadd.f32 %v327_v58, %v963_v60 }
  0xce   :  { %v970_v8 = vadd.f32 %v558_v21, %v266_v0  ;;  %567 = vtanh.f32 %v340_v12  ;;  %v325_v16 = vmul.f32 %v317_v28, %v293_v2 }
  0xcf   :  { %569 = vtanh.f32 %v342_v31  ;;  %v343_v20 = vmul.f32 0.7978846, %v335_v32 }
  0xd0   :  { %v313_v29 = vmul.f32 0.044715, %v970_v8  ;;  %v257_v44 = vpop.xlane.xlu0 %256  ;;  %v333_v57 = vadd.f32 %v325_v16, %v293_v2 }
  0xd1   :  { %v296_v38 = vadd.f32 %v558_v21, %v257_v44 }
  0xd2   :  { %v321_v18 = vmul.f32 %v313_v29, %v970_v8  ;;  %v341_v43 = vmul.f32 0.7978846, %v333_v57 }
  0xd3   :  { %v312_v55 = vmul.f32 0.044715, %v296_v38 }
  0xd4   :  { %v284_v19 = vpop.xlane.xlu1 %283  ;;  %v329_v51 = vmul.f32 %v321_v18, %v970_v8  ;;  %571 = vtanh.f32 %v341_v43 }
  0xd5   :  { %v320_v6 = vmul.f32 %v312_v55, %v296_v38  ;;  %v299_v39 = vadd.f32 %v558_v21, %v284_v19  ;;  %573 = vtanh.f32 %v343_v20 }
  0xd6   :  { %v337_v62 = vadd.f32 %v329_v51, %v970_v8 }
  0xd7   :  { %v315_v28 = vmul.f32 0.044715, %v299_v39  ;;  %v328_v0 = vmul.f32 %v320_v6, %v296_v38 }
  0xd8   :  { %v275_v12 = vpop.xlane.xlu0 %274  ;;  %v345_v31 = vmul.f32 0.7978846, %v337_v62 }
  0xd9   :  { %v323_v16 = vmul.f32 %v315_v28, %v299_v39  ;;  %v298_v44 = vadd.f32 %v558_v21, %v275_v12  ;;  %v336_v58 = vadd.f32 %v328_v0, %v296_v38  ;;  %v301_v21 = vmul.f32 0.5, %v293_v2 }
  0xdb   :  { %v314_v29 = vmul.f32 0.044715, %v298_v44  ;;  %v344_v48 = vmul.f32 0.7978846, %v336_v58  ;;  %v568_v57 = vpop.eup %567  ;;  %v331_v55 = vmul.f32 %v323_v16, %v299_v39 }
  0xdc   :  { %v356_v18 = vadd.f32 1.0, %v568_v57  ;;  %v570_v19 = vpop.eup %569 }
  0xdd   :  { %v322_v41 = vmul.f32 %v314_v29, %v298_v44  ;;  %575 = vtanh.f32 %v344_v48  ;;  %v339_v51 = vadd.f32 %v331_v55, %v299_v39  ;;  %v358_v58 = vadd.f32 1.0, %v570_v19 }
  0xde   :  { %v364_v43 = vmul.f32 %v356_v18, %v300_v63  ;;  %577 = vtanh.f32 %v345_v31  ;;  %v302_v48 = vmul.f32 0.5, %v959_v17  ;;  %v303_v29 = vmul.f32 0.5, %v963_v60 }
  0xdf   :  { %v330_v32 = vmul.f32 %v322_v41, %v298_v44  ;;  %v347_v4 = vmul.f32 0.7978846, %v339_v51  ;;  %v304_v18 = vmul.f32 0.5, %v296_v38  ;;  %v305_v19 = vmul.f32 0.5, %v970_v8 }
  0xe0   :  { %374 = vperm.xlu0 %565, %v364_v43   ;;  %v366_v16 = vmul.f32 %v358_v58, %v302_v48  ;;  %v307_v60 = vmul.f32 0.5, %v299_v39 }
  0xe1   :  { %v338_v6 = vadd.f32 %v330_v32, %v298_v44  ;;  %v572_v28 = vpop.eup %571 }
  0xe2   :  { %v357_v20 = vadd.f32 1.0, %v572_v28  ;;  %v574_v62 = vpop.eup %573  ;;  %v306_v28 = vmul.f32 0.5, %v298_v44 }
  0xe3   :  { %v346_v0 = vmul.f32 0.7978846, %v338_v6  ;;  %v359_v63 = vadd.f32 1.0, %v574_v62 }
  0xe4   :  { %v365_v12 = vmul.f32 %v357_v20, %v301_v21 }
  0xe5   :  { %579 = vtanh.f32 %v346_v0  ;;  %v367_v57 = vmul.f32 %v359_v63, %v303_v29 }
  0xe6   :  { %379 = vperm.xlu1 %566, %v365_v12   ;;  %581 = vtanh.f32 %v347_v4 }
  0xea   :  { %v576_v41 = vpop.eup %575  ;;  %384 = vperm.xlu1 %566, %v366_v16  }
  0xeb   :  { %v360_v31 = vadd.f32 1.0, %v576_v41  ;;  %v578_v2 = vpop.eup %577 }
  0xec   :  { %v361_v43 = vadd.f32 1.0, %v578_v2  ;;  %v1117_v2 = vld [vmem:[#allocation17_spill] sm:$0xff] }
  0xed   :  { %v368_v55 = vmul.f32 %v360_v31, %v304_v18 }
  0xee   :  { %389 = vperm.xlu1 %566, %v367_v57   ;;  %v369_v6 = vmul.f32 %v361_v43, %v305_v19 }
  0xf2   :  { %v580_v32 = vpop.eup %579  ;;  %394 = vperm.xlu1 %566, %v368_v55   ;;  %v1118_v55 = vld [vmem:[#allocation20_spill] sm:$0xff] }
  0xf3   :  { %v362_v17 = vadd.f32 1.0, %v580_v32  ;;  %v582_v51 = vpop.eup %581  ;;  %v1119_v32 = vld [vmem:[#allocation23_spill] sm:$0xff] }
  0xf4   :  { %v363_v20 = vadd.f32 1.0, %v582_v51  ;;  %v1121_v51 = vld [vmem:[#allocation25_spill] sm:$0xff] }
  0xf5   :  { %v370_v21 = vmul.f32 %v362_v17, %v306_v28 }
  0xf6   :  { %399 = vperm.xlu1 %566, %v369_v6   ;;  %v371_v0 = vmul.f32 %v363_v20, %v307_v60  ;;  %v1120_v6 = vld [vmem:[#allocation24_spill] sm:$0xff]  ;;  %v1122_v20 = vld [vmem:[#allocation30_spill] sm:$0xff] }
  0xfa   :  { %404 = vperm.xlu1 %566, %v370_v21  }
  0xfe   :  { %409 = vperm.xlu1 %566, %v371_v0  }
 0x15b   :  { %v375_v12 = vpop.permute.xlu0 %374 }
 0x15c   :  { %v412_v38 = vadd.f32 %v375_v12, %v707_v22  ;;  %v413_v58 = vadd.f32 %v375_v12, %v709_v23  ;;  %v414_v4 = vadd.f32 %v375_v12, %v711_v24  ;;  %v415_v8 = vadd.f32 %v375_v12, %v731_v34 }
 0x15d   :  { %v416_v62 = vadd.f32 %v375_v12, %v751_v45  ;;  %v417_v48 = vadd.f32 %v375_v12, %v753_v46  ;;  %v418_v44 = vadd.f32 %v375_v12, %v769_v56  ;;  %v419_v16 = vadd.f32 %v375_v12, %v777_v61 }
 0x15e   :  { %476 = vst [vmem:[#allocation8] sm:$0xff] %v412_v38  ;;  %477 = vst [vmem:[#allocation8 + $0x8] sm:$0xff] %v413_v58 }
 0x15f   :  { %478 = vst [vmem:[#allocation8 + $0x10] sm:$0xff] %v414_v4  ;;  %479 = vst [vmem:[#allocation8 + $0x18] sm:$0xff] %v415_v8  ;;  %v1123_v4 = vld [vmem:[#allocation18_spill] sm:$0xff] }
 0x160   :  { %480 = vst [vmem:[#allocation8 + $0x20] sm:$0xff] %v416_v62  ;;  %481 = vst [vmem:[#allocation8 + $0x28] sm:$0xff] %v417_v48  ;;  %v1125_v48 = vld [vmem:[#allocation21_spill] sm:$0xff] }
 0x161   :  { %482 = vst [vmem:[#allocation8 + $0x30] sm:$0xff] %v418_v44  ;;  %483 = vst [vmem:[#allocation8 + $0x38] sm:$0xff] %v419_v16  ;;  %v380_v22 = vpop.permute.xlu1 %379 }
 0x162   :  { %v420_v23 = vadd.f32 %v380_v22, %v761_v52  ;;  %v421_v24 = vadd.f32 %v380_v22, %v763_v53  ;;  %v422_v34 = vadd.f32 %v380_v22, %v775_v59  ;;  %v423_v45 = vadd.f32 %v380_v22, %v789_v5 }
 0x163   :  { %v424_v46 = vadd.f32 %v380_v22, %v811_v40  ;;  %v425_v56 = vadd.f32 %v380_v22, %v815_v49  ;;  %v426_v61 = vadd.f32 %v380_v22, %v837_v14  ;;  %v427_v39 = vadd.f32 %v380_v22, %v845_v47 }
 0x164   :  { %484 = vst [vmem:[#allocation8 + $0x40] sm:$0xff] %v420_v23  ;;  %485 = vst [vmem:[#allocation8 + $0x48] sm:$0xff] %v421_v24  ;;  %v1129_v24 = vld [vmem:[#allocation32_spill] sm:$0xff] }
 0x165   :  { %486 = vst [vmem:[#allocation8 + $0x50] sm:$0xff] %v422_v34  ;;  %487 = vst [vmem:[#allocation8 + $0x58] sm:$0xff] %v423_v45  ;;  %v385_v52 = vpop.permute.xlu1 %384  ;;  %v1130_v45 = vld [vmem:[#allocation33_spill] sm:$0xff] }
 0x166   :  { %488 = vst [vmem:[#allocation8 + $0x60] sm:$0xff] %v424_v46  ;;  %489 = vst [vmem:[#allocation8 + $0x68] sm:$0xff] %v425_v56  ;;  %v428_v53 = vadd.f32 %v385_v52, %v687_v9  ;;  %v429_v59 = vadd.f32 %v385_v52, %v689_v10  ;;  %v430_v5 = vadd.f32 %v385_v52, %v691_v11  ;;  %v1112_v11 = vld [vmem:[#allocation12_spill] sm:$0xff] }
 0x167   :  { %490 = vst [vmem:[#allocation8 + $0x70] sm:$0xff] %v426_v61  ;;  %491 = vst [vmem:[#allocation8 + $0x78] sm:$0xff] %v427_v39  ;;  %v431_v40 = vadd.f32 %v385_v52, %v693_v15  ;;  %v432_v14 = vadd.f32 %v385_v52, %v713_v25  ;;  %v433_v49 = vadd.f32 %v385_v52, %v715_v26  ;;  %v1113_v25 = vld [vmem:[#allocation13_spill] sm:$0xff]  ;;  %v1114_v26 = vld [vmem:[#allocation14_spill] sm:$0xff] }
 0x168   :  { %v434_v47 = vadd.f32 %v385_v52, %v723_v30  ;;  %v435_v63 = vadd.f32 %v385_v52, %v735_v36  ;;  %492 = vst [vmem:[#allocation8 + $0x80] sm:$0xff] %v428_v53  ;;  %493 = vst [vmem:[#allocation8 + $0x88] sm:$0xff] %v429_v59  ;;  %v1115_v30 = vld [vmem:[#allocation15_spill] sm:$0xff]  ;;  %v1116_v36 = vld [vmem:[#allocation16_spill] sm:$0xff] }
 0x169   :  { %494 = vst [vmem:[#allocation8 + $0x90] sm:$0xff] %v430_v5  ;;  %495 = vst [vmem:[#allocation8 + $0x98] sm:$0xff] %v431_v40  ;;  %v390_v9 = vpop.permute.xlu1 %389  ;;  %v1131_v52 = vld [vmem:[#allocation36_spill] sm:$0xff] }
 0x16a   :  { %496 = vst [vmem:[#allocation8 + $0xa0] sm:$0xff] %v432_v14  ;;  %497 = vst [vmem:[#allocation8 + $0xa8] sm:$0xff] %v433_v49  ;;  %v436_v10 = vadd.f32 %v390_v9, %v733_v35  ;;  %v437_v15 = vadd.f32 %v390_v9, %v1112_v11  ;;  %v438_v41 = vadd.f32 %v390_v9, %v1113_v25  ;;  %v1132_v49 = vld [vmem:[#allocation40_spill] sm:$0xff]  ;;  %v1137_v11 = vld [vmem:[#allocation35_spill] sm:$0xff] }
 0x16b   :  { %498 = vst [vmem:[#allocation8 + $0xb0] sm:$0xff] %v434_v47  ;;  %499 = vst [vmem:[#allocation8 + $0xb8] sm:$0xff] %v435_v63  ;;  %v439_v29 = vadd.f32 %v390_v9, %v1114_v26  ;;  %v440_v57 = vadd.f32 %v390_v9, %v1115_v30  ;;  %v441_v31 = vadd.f32 %v390_v9, %v1116_v36  ;;  %v1138_v25 = vld [vmem:[#allocation37_spill] sm:$0xff]  ;;  %v1139_v26 = vld [vmem:[#allocation38_spill] sm:$0xff] }
 0x16c   :  { %v442_v18 = vadd.f32 %v390_v9, %v1117_v2  ;;  %v443_v43 = vadd.f32 %v390_v9, %v1118_v55  ;;  %500 = vst [vmem:[#allocation8 + $0xc0] sm:$0xff] %v436_v10  ;;  %501 = vst [vmem:[#allocation8 + $0xc8] sm:$0xff] %v437_v15  ;;  %v1140_v30 = vld [vmem:[#allocation39_spill] sm:$0xff] }
 0x16d   :  { %502 = vst [vmem:[#allocation8 + $0xd0] sm:$0xff] %v438_v41  ;;  %503 = vst [vmem:[#allocation8 + $0xd8] sm:$0xff] %v439_v29  ;;  %v395_v35 = vpop.permute.xlu1 %394 }
 0x16e   :  { %504 = vst [vmem:[#allocation8 + $0xe0] sm:$0xff] %v440_v57  ;;  %505 = vst [vmem:[#allocation8 + $0xe8] sm:$0xff] %v441_v31  ;;  %v444_v19 = vadd.f32 %v395_v35, %v1119_v32  ;;  %v445_v17 = vadd.f32 %v395_v35, %v1120_v6  ;;  %v446_v28 = vadd.f32 %v395_v35, %v1121_v51 }
 0x16f   :  { %506 = vst [vmem:[#allocation8 + $0xf0] sm:$0xff] %v442_v18  ;;  %507 = vst [vmem:[#allocation8 + $0xf8] sm:$0xff] %v443_v43  ;;  %v447_v21 = vadd.f32 %v395_v35, %v853_v42  ;;  %v448_v60 = vadd.f32 %v395_v35, %v1122_v20  ;;  %v449_v0 = vadd.f32 %v395_v35, %v881_v37  ;;  %v1124_v42 = vld [vmem:[#allocation19_spill] sm:$0xff]  ;;  %v1126_v37 = vld [vmem:[#allocation22_spill] sm:$0xff] }
 0x170   :  { %v450_v12 = vadd.f32 %v395_v35, %v891_v7  ;;  %v451_v38 = vadd.f32 %v395_v35, %v911_v27  ;;  %508 = vst [vmem:[#allocation8 + $0x100] sm:$0xff] %v444_v19  ;;  %509 = vst [vmem:[#allocation8 + $0x108] sm:$0xff] %v445_v17  ;;  %v1127_v7 = vld [vmem:[#allocation26_spill] sm:$0xff]  ;;  %v1128_v27 = vld [vmem:[#allocation27_spill] sm:$0xff] }
 0x171   :  { %510 = vst [vmem:[#allocation8 + $0x110] sm:$0xff] %v446_v28  ;;  %511 = vst [vmem:[#allocation8 + $0x118] sm:$0xff] %v447_v21  ;;  %v400_v58 = vpop.permute.xlu1 %399 }
 0x172   :  { %512 = vst [vmem:[#allocation8 + $0x120] sm:$0xff] %v448_v60  ;;  %513 = vst [vmem:[#allocation8 + $0x128] sm:$0xff] %v449_v0  ;;  %v452_v8 = vadd.f32 %v400_v58, %v1123_v4  ;;  %v453_v62 = vadd.f32 %v400_v58, %v1124_v42  ;;  %v454_v44 = vadd.f32 %v400_v58, %v1125_v48 }
 0x173   :  { %514 = vst [vmem:[#allocation8 + $0x130] sm:$0xff] %v450_v12  ;;  %515 = vst [vmem:[#allocation8 + $0x138] sm:$0xff] %v451_v38  ;;  %v455_v16 = vadd.f32 %v400_v58, %v1126_v37  ;;  %v456_v22 = vadd.f32 %v400_v58, %v1127_v7  ;;  %v457_v23 = vadd.f32 %v400_v58, %v1128_v27 }
 0x174   :  { %v458_v34 = vadd.f32 %v400_v58, %v1129_v24  ;;  %v459_v46 = vadd.f32 %v400_v58, %v1130_v45  ;;  %516 = vst [vmem:[#allocation8 + $0x140] sm:$0xff] %v452_v8  ;;  %517 = vst [vmem:[#allocation8 + $0x148] sm:$0xff] %v453_v62 }
 0x175   :  { %518 = vst [vmem:[#allocation8 + $0x150] sm:$0xff] %v454_v44  ;;  %519 = vst [vmem:[#allocation8 + $0x158] sm:$0xff] %v455_v16  ;;  %v405_v56 = vpop.permute.xlu1 %404 }
 0x176   :  { %520 = vst [vmem:[#allocation8 + $0x160] sm:$0xff] %v456_v22  ;;  %521 = vst [vmem:[#allocation8 + $0x168] sm:$0xff] %v457_v23  ;;  %v460_v61 = vadd.f32 %v405_v56, %v897_v3  ;;  %v461_v39 = vadd.f32 %v405_v56, %v899_v1  ;;  %v462_v53 = vadd.f32 %v405_v56, %v1131_v52  ;;  %v1133_v1 = vld [vmem:[#allocation28_spill] sm:$0xff] }
 0x177   :  { %522 = vst [vmem:[#allocation8 + $0x170] sm:$0xff] %v458_v34  ;;  %523 = vst [vmem:[#allocation8 + $0x178] sm:$0xff] %v459_v46  ;;  %v463_v59 = vadd.f32 %v405_v56, %v919_v54  ;;  %v464_v5 = vadd.f32 %v405_v56, %v935_v13  ;;  %v465_v40 = vadd.f32 %v405_v56, %v943_v33  ;;  %v1134_v13 = vld [vmem:[#allocation29_spill] sm:$0xff]  ;;  %v1135_v33 = vld [vmem:[#allocation31_spill] sm:$0xff] }
 0x178   :  { %v466_v14 = vadd.f32 %v405_v56, %v949_v50  ;;  %v467_v47 = vadd.f32 %v405_v56, %v1132_v49  ;;  %524 = vst [vmem:[#allocation8 + $0x180] sm:$0xff] %v460_v61  ;;  %525 = vst [vmem:[#allocation8 + $0x188] sm:$0xff] %v461_v39  ;;  %v1136_v50 = vld [vmem:[#allocation34_spill] sm:$0xff] }
 0x179   :  { %526 = vst [vmem:[#allocation8 + $0x190] sm:$0xff] %v462_v53  ;;  %527 = vst [vmem:[#allocation8 + $0x198] sm:$0xff] %v463_v59  ;;  %v410_v3 = vpop.permute.xlu1 %409 }
 0x17a   :  { %528 = vst [vmem:[#allocation8 + $0x1a0] sm:$0xff] %v464_v5  ;;  %529 = vst [vmem:[#allocation8 + $0x1a8] sm:$0xff] %v465_v40  ;;  %v468_v54 = vadd.f32 %v410_v3, %v1133_v1  ;;  %v469_v63 = vadd.f32 %v410_v3, %v1134_v13  ;;  %v470_v9 = vadd.f32 %v410_v3, %v1135_v33 }
 0x17b   :  { %530 = vst [vmem:[#allocation8 + $0x1b0] sm:$0xff] %v466_v14  ;;  %531 = vst [vmem:[#allocation8 + $0x1b8] sm:$0xff] %v467_v47  ;;  %v471_v10 = vadd.f32 %v410_v3, %v1136_v50  ;;  %v472_v15 = vadd.f32 %v410_v3, %v1137_v11  ;;  %v473_v41 = vadd.f32 %v410_v3, %v1138_v25 }
 0x17c   :  { %v474_v29 = vadd.f32 %v410_v3, %v1139_v26  ;;  %v475_v57 = vadd.f32 %v410_v3, %v1140_v30  ;;  %532 = vst [vmem:[#allocation8 + $0x1c0] sm:$0xff] %v468_v54  ;;  %533 = vst [vmem:[#allocation8 + $0x1c8] sm:$0xff] %v469_v63 }
 0x17d   :  { %534 = vst [vmem:[#allocation8 + $0x1d0] sm:$0xff] %v470_v9  ;;  %535 = vst [vmem:[#allocation8 + $0x1d8] sm:$0xff] %v471_v10 }
 0x17e   :  { %536 = vst [vmem:[#allocation8 + $0x1e0] sm:$0xff] %v472_v15  ;;  %537 = vst [vmem:[#allocation8 + $0x1e8] sm:$0xff] %v473_v41 }
 0x17f   :  { %538 = vst [vmem:[#allocation8 + $0x1f0] sm:$0xff] %v474_v29  ;;  %539 = vst [vmem:[#allocation8 + $0x1f8] sm:$0xff] %v475_v57 }
 0x180   :  { %634 = shalt.err (!%p631_p0)
}
 0x181   :  { %551 = dma.vmem_to_hbm [thread:$0]  %s546_s1, 8192, %s1053_s3, [#allocation5], %s650_s17, %s650_s17, %s651_s18  }
 0x182   :  { %647 = dma.done.wait [#allocation5], 8192  }
 0x183   :  { %648 = vsyncadd [#allocation5], 4294959104 }
 0x184   :  { %555 = vsyncpa [#allocation4], 1 }
 0x185   :  { %556 = vsyncpa [#allocation7], 1 }
 0x186   :  { %557 = vsyncpa [#allocation5], 1 }

</bundles_post_ra>
